<compile_context>
chip_gen: v6e
topology: v6e:2x2x1
jax: 0.10.0
libtpu: 0.0.40
codegen_flags: <defaults>
</compile_context>

<pallas_src>
import jax
import jax.numpy as jnp
from jax.experimental import pallas as pl
from jax.experimental.pallas import tpu as pltpu


def _round_up(a, b):
    return ((a + b - 1) // b) * b


def _cdiv(a, b):
    return (a + b - 1) // b


def _choose_tiles(N, tile_n_target=256, tile_k_target=2048):
    """Pick (tile_n, tile_k, N_pad) for the fused aggregation kernel.

    tile_n : output-row tile.  Shrunk for small graphs so the grid keeps >= 2
             row tiles (the "parallel" axis must feed both v7x TensorCores).
    tile_k : reduction (N-axis) tile, decoupled from tile_n and pushed toward
             the target so adj DMA rows are long/contiguous and grid-step
             overhead (~0.35 us/step) stays negligible.
    N_pad  : N rounded up so it is divisible by both tiles, with padding
             bounded so the (dominant) adj stream is not inflated.
    """
    assert tile_n_target % 128 == 0 and tile_n_target >= 128
    assert tile_k_target >= tile_n_target

    tile_n = min(tile_n_target, max(8, _round_up(_cdiv(N, 2), 8)))
    n_row_pad = _round_up(N, tile_n)
    n_tiles = n_row_pad // tile_n

    k_mult = max(1, min(tile_k_target // tile_n, n_tiles))
    # Don't let reduction-tile padding blow up the adj stream: shrink the K
    # tile until the extra padded rows are at most ~1/8 of the graph.
    pad_budget = n_row_pad + max(tile_n, n_row_pad // 8)
    while k_mult > 1 and _round_up(n_tiles, k_mult) * tile_n > pad_budget:
        k_mult -= 1

    tile_k = tile_n * k_mult
    N_pad = _round_up(n_tiles, k_mult) * tile_n
    return tile_n, tile_k, N_pad


def adjacency_pad_size(N, tile_n_target=256, tile_k_target=2048):
    """Padded adjacency size expected by gcn_svd_forward for this N."""
    return _choose_tiles(N, tile_n_target, tile_k_target)[2]


def prepare_adjacency(adj, N_pad=None, compute_dtype=jnp.bfloat16,
                      tile_n_target=256, tile_k_target=2048):
    """Pad + cast the (dense) adjacency ONCE; reuse across layers / steps.

    Doing this inside every forward would read N^2 f32 and write N^2 bf16
    before the kernel even runs -- more HBM traffic than the kernel's own adj
    read -- so it is hoisted out and amortized.
    """
    N = adj.shape[0]
    if N_pad is None:
        N_pad = adjacency_pad_size(N, tile_n_target, tile_k_target)
    return jnp.pad(adj, ((0, N_pad - N), (0, N_pad - N))).astype(compute_dtype)


# --------------------- fused transform + aggregation kernel ---------------------
# out[i, :] = ReLU( sum_k adj[i_tile, k_tile] @ (x[k_tile] @ W) + bias )
#
# TODO(synk): torch.spmm uses a sparse adjacency; adj here is dense.  A sparse
# formulation would use scalar-prefetched CSR/neighbor indices driving a
# data-dependent index_map / manual DMA gather of x rows.

def _fused_gcn_kernel(adj_ref, x_ref, w_ref, b_ref, out_ref, acc_ref):
    k = pl.program_id(1)

    @pl.when(k == 0)
    def _():
        acc_ref[...] = jnp.zeros_like(acc_ref)

    # Recompute this K-slab's support from the resident weight.  Extra MXU
    # work is ~in_f/tile_n of the aggregation matmul and the kernel is
    # HBM-bound on adj, so it is effectively free.
    sup = jnp.dot(x_ref[...], w_ref[...], preferred_element_type=jnp.float32)
    acc_ref[...] += jnp.dot(adj_ref[...], sup.astype(adj_ref.dtype),
                            preferred_element_type=jnp.float32)

    @pl.when(k == pl.num_programs(1) - 1)
    def _():
        out_ref[...] = jnp.maximum(acc_ref[...] + b_ref[...],
                                   0.0).astype(out_ref.dtype)


# ------------------------------ wrapper ---------------------------------

def gcn_svd_forward(x, adj, U, s, Vt, bias, *, r, tile_n_target=256,
                    tile_k_target=2048, compute_dtype=jnp.bfloat16,
                    out_dtype=None):
    """Pallas implementation of GraphConvolutionBSSVD.forward (sigma = ReLU).

    `adj` may be the raw (N, N) matrix or the output of prepare_adjacency()
    (padded + compute_dtype); pass the latter to amortize the pad/cast.
    """
    N, in_f = x.shape
    out_f = Vt.shape[1]
    out_dtype = x.dtype if out_dtype is None else out_dtype

    tile_n, tile_k, N_pad = _choose_tiles(N, tile_n_target, tile_k_target)
    out_pad = _round_up(out_f, 128)          # lane-dense, unmasked stores
    n_row_tiles = N_pad // tile_n
    n_k_tiles = N_pad // tile_k

    # Adjacency: use the pre-prepared (padded, compute_dtype) matrix if given.
    if adj.shape == (N_pad, N_pad) and adj.dtype == compute_dtype:
        adjp = adj
    elif adj.shape == (N, N):
        adjp = prepare_adjacency(adj, N_pad, compute_dtype)
    else:
        raise ValueError(
            f"adj must be (N, N)={N, N} or prepared (N_pad, N_pad)={N_pad, N_pad} "
            f"{compute_dtype}, got {adj.shape} {adj.dtype}")

    # Activations: padded + cast per call (N * in_f only -- cheap).
    xp = jnp.pad(x, ((0, N_pad - N), (0, 0))).astype(compute_dtype)

    # Collapse the truncated SVD into one resident weight.  For small r the
    # factored (x @ U) * s @ Vt chain would leave the MXU contraction depth
    # nearly empty and add an extra low-precision rounding step, so the
    # collapsed W is both faster and more accurate; the collapse itself is a
    # one-time (in_f x r x out_f) matmul outside the hot path.
    # TODO(synk): for very large in_f/out_f with genuinely low rank (r >= 128),
    # add a fused low-rank variant keeping U[:, :r] and (s*Vt) resident instead.
    W = (U[:, :r] * s[:r]) @ Vt[:r, :]                        # (in_f, out_f), f32
    Wp = jnp.pad(W, ((0, 0), (0, out_pad - out_f))).astype(compute_dtype)
    bp = jnp.pad(bias.reshape(1, out_f).astype(jnp.float32),
                 ((0, 0), (0, out_pad - out_f)))

    # VMEM plan: double-buffered streams + resident W/bias + f32 accumulator.
    # Explicit limit is load-bearing on v5e (16 MiB default scoped VMEM) and
    # capped at 48 MiB so it never exceeds v7x's 64 MiB per-TC budget.
    bpe = jnp.finfo(compute_dtype).bits // 8
    vmem_need = (2 * tile_n * tile_k * bpe            # adj tiles (double-buffered)
                 + 2 * tile_k * in_f * bpe            # x slabs
                 + 2 * in_f * out_pad * bpe           # resident W
                 + 2 * out_pad * 4                    # bias
                 + 2 * tile_n * out_pad * 4           # output tiles (upper bound)
                 + tile_n * out_pad * 4)              # f32 accumulator
    vmem_limit = int(min(max(2 * vmem_need, 16 << 20), 48 << 20))

    out = pl.pallas_call(
        _fused_gcn_kernel,
        out_shape=jax.ShapeDtypeStruct((N_pad, out_pad), out_dtype),
        grid_spec=pltpu.PrefetchScalarGridSpec(
            num_scalar_prefetch=0,
            grid=(n_row_tiles, n_k_tiles),            # reduction axis last
            in_specs=[
                pl.BlockSpec((tile_n, tile_k), lambda i, k: (i, k)),   # adj tile
                pl.BlockSpec((tile_k, in_f), lambda i, k: (k, 0)),     # x slab
                pl.BlockSpec((in_f, out_pad), lambda i, k: (0, 0)),    # W (resident)
                pl.BlockSpec((1, out_pad), lambda i, k: (0, 0)),       # bias
            ],
            out_specs=pl.BlockSpec((tile_n, out_pad), lambda i, k: (i, 0)),
            scratch_shapes=[pltpu.VMEM((tile_n, out_pad), jnp.float32)],
        ),
        compiler_params=pltpu.CompilerParams(
            dimension_semantics=("parallel", "arbitrary"),
            vmem_limit_bytes=vmem_limit),
    )(adjp, xp, Wp, bp)

    # Padded rows/cols contain ReLU(bias) garbage -- sliced off here, never reused.
    return out[:N, :out_f]


def reference_forward(x, adj, U, s, Vt, bias, *, r):
    support = x @ U[:, :r]
    support = support * s[:r]
    support = support @ Vt[:r, :]
    out = adj @ support + bias
    return jnp.maximum(out, 0.0)


if __name__ == "__main__":
    # Small, deterministic problem consistent with the module's shapes.
    # N intentionally not a multiple of the tile to exercise the padding path.
    N, in_features, out_features = 500, 32, 16

    key = jax.random.PRNGKey(0)
    kx, kadj, kw, kb = jax.random.split(key, 4)

    x = jax.random.normal(kx, (N, in_features), dtype=jnp.float32)

    # Symmetric, row-normalized dense adjacency (stand-in for the sparse adj).
    a = jax.random.uniform(kadj, (N, N), dtype=jnp.float32)
    a = (a + a.T) * 0.5 + jnp.eye(N, dtype=jnp.float32)
    adj = a / jnp.sum(a, axis=1, keepdims=True)

    # Deterministic "original layer" parameters; the SVD is the one-time setup
    # the module performs in __init__ / svd().
    weight = jax.random.normal(kw, (in_features, out_features), dtype=jnp.float32) * 0.1
    bias = jax.random.normal(kb, (out_features,), dtype=jnp.float32) * 0.1

    U, s, Vt = jnp.linalg.svd(weight, full_matrices=False)   # Vt is already V^T

    # One-time adjacency preparation, amortized across layers / forward calls.
    N_pad = adjacency_pad_size(N)
    adj_prepared = jax.block_until_ready(prepare_adjacency(adj, N_pad))

    # r = get_max_rank() and a truncated r=8; both use the collapsed-W fused path.
    for r in (min(in_features, out_features), 8):
        out = gcn_svd_forward(x, adj_prepared, U, s, Vt, bias, r=r)
        out = jax.block_until_ready(out)

        ref = reference_forward(x, adj, U, s, Vt, bias, r=r)
        assert out.shape == (N, out_features)
        # bf16 streamed operands with f32 accumulation -> modest tolerance.
        assert jnp.allclose(out, ref, atol=1e-2, rtol=1e-2), f"mismatch vs reference (r={r})"

    print("KERNEL_OK")
</pallas_src>

<mosaic_0001>
module attributes {stable_mosaic.version = 11 : i64} {
  func.func @_fused_gcn_kernel(%arg0: i32, %arg1: i32, %arg2: memref<256x512xbf16, #tpu.memory_space<vmem>>, %arg3: memref<512x32xbf16, #tpu.memory_space<vmem>>, %arg4: memref<32x128xbf16, #tpu.memory_space<vmem>>, %arg5: memref<1x128xf32, #tpu.memory_space<vmem>>, %arg6: memref<256x128xf32, #tpu.memory_space<vmem>>, %arg7: memref<256x128xf32, #tpu.memory_space<vmem>>) attributes {dimension_semantics = [#tpu.dimension_semantics<parallel>, #tpu.dimension_semantics<arbitrary>], iteration_bounds = array<i64: 2, 1>, scalar_prefetch = 0 : i64, scratch_operands = 1 : i64, tpu.core_type = #tpu.core_type<tc>, window_params = [{transform_indices = @transform_0, window_bounds = array<i64: 256, 512>}, {transform_indices = @transform_1, window_bounds = array<i64: 512, 32>}, {pipeline_mode = #tpu.pipeline_mode<synchronous>, transform_indices = @transform_2, window_bounds = array<i64: 32, 128>}, {pipeline_mode = #tpu.pipeline_mode<synchronous>, transform_indices = @transform_3, window_bounds = array<i64: 1, 128>}, {transform_indices = @transform_4, window_bounds = array<i64: 256, 128>}]} {
    %c0_i32 = arith.constant 0 : i32
    %0 = arith.cmpi eq, %arg1, %c0_i32 : i32
    %1 = arith.extui %0 : i1 to i32
    %c0_i32_0 = arith.constant 0 : i32
    %2 = arith.cmpi ne, %1, %c0_i32_0 : i32
    scf.if %2 {
      %cst_13 = arith.constant 0.000000e+00 : f32
      %15 = vector.broadcast %cst_13 : f32 to vector<256x128xf32>
      %c0_14 = arith.constant 0 : index
      %c0_15 = arith.constant 0 : index
      %16 = vector.load %arg7[%c0_14, %c0_15] : memref<256x128xf32, #tpu.memory_space<vmem>>, vector<256x128xf32>
      tpu.vector_store %arg7[%c0_14, %c0_15], %15 {strides = array<i32>} : memref<256x128xf32, #tpu.memory_space<vmem>>, vector<256x128xf32>,
    } else {
    }
    %c0 = arith.constant 0 : index
    %c0_1 = arith.constant 0 : index
    %3 = vector.load %arg3[%c0, %c0_1] : memref<512x32xbf16, #tpu.memory_space<vmem>>, vector<512x32xbf16>
    %c0_2 = arith.constant 0 : index
    %c0_3 = arith.constant 0 : index
    %4 = vector.load %arg4[%c0_2, %c0_3] : memref<32x128xbf16, #tpu.memory_space<vmem>>, vector<32x128xbf16>
    %cst = arith.constant dense<0.000000e+00> : vector<512x128xf32>
    %5 = tpu.matmul %3, %4, %cst {dimension_numbers = #tpu.dot_dimension_numbers<[1], [0], [0], [1], [0, 0, 1, 1], [], []>} : vector<512x32xbf16>, vector<32x128xbf16>, vector<512x128xf32> -> vector<512x128xf32>
    %c0_4 = arith.constant 0 : index
    %c0_5 = arith.constant 0 : index
    %6 = vector.load %arg7[%c0_4, %c0_5] : memref<256x128xf32, #tpu.memory_space<vmem>>, vector<256x128xf32>
    %c0_6 = arith.constant 0 : index
    %c0_7 = arith.constant 0 : index
    %7 = vector.load %arg2[%c0_6, %c0_7] : memref<256x512xbf16, #tpu.memory_space<vmem>>, vector<256x512xbf16>
    %8 = arith.truncf %5 : vector<512x128xf32> to vector<512x128xbf16>
    %cst_8 = arith.constant dense<0.000000e+00> : vector<256x128xf32>
    %9 = tpu.matmul %7, %8, %cst_8 {dimension_numbers = #tpu.dot_dimension_numbers<[1], [0], [0], [1], [0, 0, 1, 1], [], []>} : vector<256x512xbf16>, vector<512x128xbf16>, vector<256x128xf32> -> vector<256x128xf32>
    %10 = arith.addf %6, %9 : vector<256x128xf32>
    %c0_9 = arith.constant 0 : index
    %c0_10 = arith.constant 0 : index
    %11 = vector.load %arg7[%c0_9, %c0_10] : memref<256x128xf32, #tpu.memory_space<vmem>>, vector<256x128xf32>
    tpu.vector_store %arg7[%c0_9, %c0_10], %10 {strides = array<i32>} : memref<256x128xf32, #tpu.memory_space<vmem>>, vector<256x128xf32>,
    %c0_i32_11 = arith.constant 0 : i32
    %12 = arith.cmpi eq, %arg1, %c0_i32_11 : i32
    %13 = arith.extui %12 : i1 to i32
    %c0_i32_12 = arith.constant 0 : i32
    %14 = arith.cmpi ne, %13, %c0_i32_12 : i32
    scf.if %14 {
      %c0_13 = arith.constant 0 : index
      %c0_14 = arith.constant 0 : index
      %15 = vector.load %arg7[%c0_13, %c0_14] : memref<256x128xf32, #tpu.memory_space<vmem>>, vector<256x128xf32>
      %c0_15 = arith.constant 0 : index
      %c0_16 = arith.constant 0 : index
      %16 = vector.load %arg5[%c0_15, %c0_16] : memref<1x128xf32, #tpu.memory_space<vmem>>, vector<1x128xf32>
      %17 = vector.broadcast %16 : vector<1x128xf32> to vector<256x128xf32>
      %18 = arith.addf %15, %17 : vector<256x128xf32>
      %cst_17 = arith.constant 0.000000e+00 : f32
      %19 = vector.broadcast %cst_17 : f32 to vector<256x128xf32>
      %20 = arith.maximumf %18, %19 : vector<256x128xf32>
      %c0_18 = arith.constant 0 : index
      %c0_19 = arith.constant 0 : index
      %21 = vector.load %arg6[%c0_18, %c0_19] : memref<256x128xf32, #tpu.memory_space<vmem>>, vector<256x128xf32>
      tpu.vector_store %arg6[%c0_18, %c0_19], %20 {strides = array<i32>} : memref<256x128xf32, #tpu.memory_space<vmem>>, vector<256x128xf32>,
    } else {
    }
    return
  }
  func.func @transform_0(%arg0: i32, %arg1: i32) -> (i32, i32) {
    %c0_i32 = arith.constant 0 : i32
    return %arg0, %arg1 : i32, i32
  }
  func.func @transform_1(%arg0: i32, %arg1: i32) -> (i32, i32) {
    %c0_i32 = arith.constant 0 : i32
    %c0_i32_0 = arith.constant 0 : i32
    return %arg1, %c0_i32 : i32, i32
  }
  func.func @transform_2(%arg0: i32, %arg1: i32) -> (i32, i32) {
    %c0_i32 = arith.constant 0 : i32
    %c0_i32_0 = arith.constant 0 : i32
    %c0_i32_1 = arith.constant 0 : i32
    return %c0_i32, %c0_i32_0 : i32, i32
  }
  func.func @transform_3(%arg0: i32, %arg1: i32) -> (i32, i32) {
    %c0_i32 = arith.constant 0 : i32
    %c0_i32_0 = arith.constant 0 : i32
    %c0_i32_1 = arith.constant 0 : i32
    return %c0_i32, %c0_i32_0 : i32, i32
  }
  func.func @transform_4(%arg0: i32, %arg1: i32) -> (i32, i32) {
    %c0_i32 = arith.constant 0 : i32
    %c0_i32_0 = arith.constant 0 : i32
    return %arg0, %c0_i32 : i32, i32
  }
}

</mosaic_0001>

<bundles_post_ra>
// kernel: tpu_custom_call.1
= control target key start
LH: loop header
LB: loop body
LE: loop exit
PB: predicated region body
PF: predicated region fallthrough
CT: control target
= control target key end

     0   :  { %9 = vsyncpa [#allocation4], 0  ;;  %s3363_s0 = inlined_call_operand.hbm [shape: bf16[512,512], index: 0, kind: input, shape index: {}]   ;;  %s3364_s1 = inlined_call_operand.vmem [shape: bf16[512,32], index: 1, kind: input, shape index: {}]   ;;  %s3365_s2 = inlined_call_operand.vmem [shape: bf16[32,128], index: 2, kind: input, shape index: {}]   ;;  %s3366_s3 = inlined_call_operand.vmem [shape: f32[1,128], index: 3, kind: input, shape index: {}]   ;;  %s3367_s4 = inlined_call_operand.hbm [shape: f32[512,128], index: 4, kind: output, shape index: {}]  }
   0x1   :  { %11 = vsyncpa [#allocation4 + $0x1], 0 }
   0x2   :  { %12 = vsyncpa [#allocation5], 0 }
   0x3   :  { %14 = vsyncpa [#allocation5 + $0x1], 0  ;;  %s2824_s15 = smov 0   ;;  %s2826_s16 = smov 0  }
   0x4   :  { %s2828_s17 = smov 0   ;;  %s2830_s18 = smov 0  }
   0x5   :  { %s2832_s19 = smov 0   ;;  %s2834_s20 = smov 0  }
   0x6 LB: > { %s2006_s21 = sadd.s32 4294967295, %s2791_s20   ;;  %s2007_s22 = sadd.s32 4294967294, %s2791_s20   ;;  %s2791_s20 = sphi %s2834_s20, %s20_s20   ;;  %s2787_s19 = sphi %s2832_s19, %s3414_s19   ;;  %s2783_s18 = sphi %s2830_s18, %s3413_s18   ;;  %s2779_s17 = sphi %s2828_s17, %s3412_s17   ;;  %s2775_s16 = sphi %s2826_s16, %s3411_s16   ;;  %s2771_s15 = sphi %s2824_s15, %s3410_s15  }
   0x7   : > { %s32_s23 = sadd.s32 1, %s2787_s19  ;;  %s41_s24 = sadd.s32 1, %s2779_s17 }
   0x8   : > { %p34_p0 = scmp.ge.s32.totalorder %s32_s23, 2  ;;  %p48_p1 = scmp.ne.s32.totalorder %s2779_s17, %s2775_s16 }
   0x9   : > { %p49_p2 = scmp.eq.s32.totalorder %s2791_s20, 0  ;;  %p54_p3 = scmp.ne.s32.totalorder %s2775_s16, %s2771_s15 }
   0xa   : > { %s3416_s23 = smov (%p34_p0, %s32_s23), 0  ;;  %p55_p5 = scmp.eq.s32.totalorder %s2006_s21, 0 }
   0xb   : > { %p2865_p4 = por %p49_p2, %p48_p1  ;;  %s36_s26 = ssub.s32 %s2787_s19, %s3416_s23 }
   0xc   : > { %p146_p6 = scmp.eq.s32.totalorder %s2006_s21, 1  ;;  %p39_p7 = scmp.eq.s32.totalorder %s36_s26, 0 }
   0xd   : > { %p2871_p8 = por %p55_p5, %p54_p3  ;;  %p152_p10 = scmp.eq.s32.totalorder %s2007_s22, 1 }
   0xe   : > { %p2875_p9 = por %p146_p6, %p48_p1  ;;  %p2499_p13 = scmp.lt.s32.totalorder %s2791_s20, 2 }
   0xf   : > { %s2880_s29 = scalar_select %p39_p7, %s2779_s17, %s41_s24  }
  0x10   : > { %p2882_p11 = por %p152_p10, %p54_p3  ;;  %s187_s5 = sand.u32 1, %s2779_s17  }
  0x11   : > { %s2011_s6 = sshll.u32 %s187_s5, 9  ;;  %s2155_s7 = sshll.u32 %s2787_s19, 13 }
  0x12   : > { %s200_s10 = scalar_lea.hbm %s3363_s0, %s2155_s7  ;;  %s191_s11 = scalar_lea.vmem [#allocation3], %s2011_s6 }
  0x13   : > { %s201_s12 = sshll.u32 %s191_s11, 4  ;;  %p2895_p0 = pnand %p2499_p13, %p2865_p4  ;;  %s202_s12 = int_to_ptr.vmem [resolvable:$true] %s201_s12 }
  0x14   : > { %p2015_p1 = scmp.ge.s32.totalorder %s2791_s20, 1  ;;  %s188_s14 = scalar_lea.sflag [#allocation4], %s187_s5 }
  0x15   : > { %p2685_p2 = pneg %p2895_p0  ;;  %s2696_s21 = scalar_lea.vmem %s202_s12, 8192 }
  0x16   : > { %p2697_p3 = scmp.ne.s32.totalorder %s202_s12, %s2696_s21  ;;  %s2793_s22 = smov [#allocation3]  }
  0x17   : > { %s2701_s24 = sshll.u32 %s2793_s22, 4  ;;  %s2702_s24 = int_to_ptr.vmem [resolvable:$false] %s2701_s24 }
  0x18   : > { %p2699_p5 = pnand %p2697_p3, %p2685_p2  ;;  %s2703_s26 = scalar_lea.vmem %s2702_s24, 16384 }
  0x19   : > { %p2704_p7 = scmp.lt.s32.totalorder %s202_s12, %s2702_s24  ;;  %p2705_p10 = scmp.lt.s32.totalorder %s2703_s26, %s2696_s21 }
  0x1a   : > { %p2700_p6 = pneg %p2699_p5 }
  0x1b   : > { %p2706_p12 = por %p2705_p10, %p2704_p7 }
  0x1d   : > { %p2707_p4 = pnand %p2706_p12, %p2700_p6 }
  0x1f   : > { %2710 = shalt.err (!%p2707_p4)
}
  0x20   : > { %s2794_s25 = smov 256   ;;  %s2795_s5 = smov 16  }
  0x21   : > { %2494 = dma.hbm_to_vmem [thread:$0]  (!%p2895_p0), %s200_s10, 8192, %s202_s12, %s188_s14, %s2794_s25, %s2794_s25, %s2795_s5  }
  0x22   : > { %p209_p13 = scmp.lt.s32.totalorder %s2791_s20, 3 }
  0x24   : > { %p210_p2 = pnand %p2015_p1, %p209_p13 }
  0x26   : > { %213 = sbr.rel (%p210_p2) target bundleno = 684 (0x2ac), region = 36 }
  0x2b   : > { %s2908_s6 = sand.u32 1, %s2775_s16  }
  0x2c   : > { %s2016_s7 = sshll.u32 %s2908_s6, 9  ;;  %s216_s8 = scalar_lea.sflag [#allocation4], %s2908_s6 }
  0x2d   : > { %s2912_s9 = scalar_lea.vmem [#allocation3], %s2016_s7 }
  0x2e   : > { %2762 = dma.done.wait (%p2871_p8), %s216_s8, 8192  }
  0x2f   : > { %2764 = vsyncadd (%p2871_p8), %s216_s8, 4294959104  ;;  %v2553_v0 = vld [vmem:[%s3365_s2 + $0x8] sm:$0xff]   ;;  %v2554_v1 = vld [vmem:[%s3365_s2] sm:$0xff]   ;;  %vm535_vm0 = vcmask 261120   ;;  %s2017_s10 = sshll.u32 %s2908_s6, 8  ;;  %s2156_s11 = sshll.u32 %s2783_s18, 12 }
  0x30   : > { %2415 = vmatprep.subr.bf16.mxu0 %v2553_v0  ;;  %2483 = vmatprep.subr.bf16.mxu1 %v2553_v0  ;;  %v2555_v2 = vld [vmem:[%s3364_s1] sm:$0xff]   ;;  %v2557_v4 = vld [vmem:[%s3364_s1 + $0x8] sm:$0xff]   ;;  %v2559_v6 = vld [vmem:[%s3364_s1 + $0x10] sm:$0xff]   ;;  %s3312_s21 = scalar_lea.hbm %s3367_s4, %s2156_s11  ;;  %s1894_s22 = scalar_lea.sflag [#allocation5], %s2908_s6 }
  0x31   : > { %2416 = vmatpush3.bf16.msra.mxu0 %v2553_v0  ;;  %2485 = vmatpush3.bf16.msra.mxu1 %v2553_v0  ;;  %v2556_v3 = vld [vmem:[%s3364_s1 + $0x80] sm:$0xff]   ;;  %v2558_v5 = vld [vmem:[%s3364_s1 + $0x88] sm:$0xff]   ;;  %v2560_v7 = vld [vmem:[%s3364_s1 + $0x90] sm:$0xff]   ;;  %s2796_s18 = smov [#allocation6]  }
  0x32   : > { %2417 = vmatprep.subr.bf16.mxu0 %v2554_v1  ;;  %2484 = vmatprep.subr.bf16.mxu1 %v2554_v1  ;;  %v2561_v8 = vld [vmem:[%s3364_s1 + $0x18] sm:$0xff]   ;;  %v2563_v10 = vld [vmem:[%s3364_s1 + $0x20] sm:$0xff]   ;;  %v2565_v12 = vld [vmem:[%s3364_s1 + $0x28] sm:$0xff]   ;;  %s2715_s24 = sshll.u32 %s2796_s18, 4  ;;  %s2716_s24 = int_to_ptr.vmem [resolvable:$false] %s2715_s24 }
  0x33   : > { %2419 = vmatprep.mubr.msk.bf16.mxu0 %vm535_vm0, %v2555_v2  ;;  %2451 = vmatprep.mubr.msk.bf16.mxu1 %vm535_vm0, %v2556_v3  ;;  %v2562_v9 = vld [vmem:[%s3364_s1 + $0x98] sm:$0xff]   ;;  %v2564_v11 = vld [vmem:[%s3364_s1 + $0xa0] sm:$0xff]   ;;  %v2566_v13 = vld [vmem:[%s3364_s1 + $0xa8] sm:$0xff]   ;;  %s2717_s26 = scalar_lea.vmem %s2716_s24, 8192 }
  0x34   : > { %v2567_v14 = vld [vmem:[%s3364_s1 + $0x30] sm:$0xff]   ;;  %v2569_v16 = vld [vmem:[%s3364_s1 + $0x38] sm:$0xff]   ;;  %v2571_v18 = vld [vmem:[%s3364_s1 + $0x40] sm:$0xff]  }
  0x35   : > { %2418 = vmatpush3.bf16.msra.mxu0 %v2554_v1  ;;  %2486 = vmatpush3.bf16.msra.mxu1 %v2554_v1  ;;  %v2568_v15 = vld [vmem:[%s3364_s1 + $0xb0] sm:$0xff]   ;;  %v2570_v17 = vld [vmem:[%s3364_s1 + $0xb8] sm:$0xff]   ;;  %v2572_v19 = vld [vmem:[%s3364_s1 + $0xc0] sm:$0xff]  }
  0x36   : > { %v2573_v20 = vld [vmem:[%s3364_s1 + $0x48] sm:$0xff]   ;;  %v2575_v22 = vld [vmem:[%s3364_s1 + $0x50] sm:$0xff]   ;;  %v2577_v24 = vld [vmem:[%s3364_s1 + $0x58] sm:$0xff]  }
  0x37   : > { %v2574_v21 = vld [vmem:[%s3364_s1 + $0xc8] sm:$0xff]   ;;  %v2576_v23 = vld [vmem:[%s3364_s1 + $0xd0] sm:$0xff]   ;;  %v2578_v25 = vld [vmem:[%s3364_s1 + $0xd8] sm:$0xff]  }
  0x38   : > { %2420 = vmatmul.mubr.msk.bf16.vlgmr.msra.gmra.mxu0 %vm535_vm0, %v2557_v4  ;;  %2452 = vmatmul.mubr.msk.bf16.vlgmr.msra.gmra.mxu1 %vm535_vm0, %v2558_v5  ;;  %v2579_v26 = vld [vmem:[%s3364_s1 + $0x60] sm:$0xff]   ;;  %v2581_v28 = vld [vmem:[%s3364_s1 + $0x68] sm:$0xff]   ;;  %v2583_v30 = vld [vmem:[%s3364_s1 + $0x70] sm:$0xff]  }
  0x39   : > { %2423 = vmatprep.mubr.msk.bf16.mxu0 %vm535_vm0, %v2559_v6  ;;  %2455 = vmatprep.mubr.msk.bf16.mxu1 %vm535_vm0, %v2560_v7  ;;  %v2580_v27 = vld [vmem:[%s3364_s1 + $0xe0] sm:$0xff]   ;;  %v2582_v29 = vld [vmem:[%s3364_s1 + $0xe8] sm:$0xff]   ;;  %v2584_v31 = vld [vmem:[%s3364_s1 + $0xf0] sm:$0xff]  }
  0x3a   : > { %v2585_v32 = vld [vmem:[%s3364_s1 + $0x78] sm:$0xff]   ;;  %v2589_v34 = vld [vmem:[%s2912_s9 + $0x4] ss:$16 sps:$4 sm:$0xff]  }
  0x3b   : > { %v2586_v33 = vld [vmem:[%s3364_s1 + $0xf8] sm:$0xff]  }
  0x3c   : > { %v2592_v35 = vld [vmem:[%s2912_s9 + $0xc] ss:$16 sps:$4 sm:$0xff]  }
  0x40   : > { %2424 = vmatmul.mubr.msk.bf16.gmra.mxu0 %vm535_vm0, %v2561_v8  ;;  %2456 = vmatmul.mubr.msk.bf16.gmra.mxu1 %vm535_vm0, %v2562_v9 }
  0x41   : > { %2427 = vmatprep.mubr.msk.bf16.mxu0 %vm535_vm0, %v2563_v10  ;;  %2459 = vmatprep.mubr.msk.bf16.mxu1 %vm535_vm0, %v2564_v11 }
  0x48   : > { %2428 = vmatmul.mubr.msk.bf16.gmra.mxu0 %vm535_vm0, %v2565_v12  ;;  %2460 = vmatmul.mubr.msk.bf16.gmra.mxu1 %vm535_vm0, %v2566_v13 }
  0x49   : > { %2431 = vmatprep.mubr.msk.bf16.mxu0 %vm535_vm0, %v2567_v14  ;;  %2463 = vmatprep.mubr.msk.bf16.mxu1 %vm535_vm0, %v2568_v15 }
  0x50   : > { %2432 = vmatmul.mubr.msk.bf16.gmra.mxu0 %vm535_vm0, %v2569_v16  ;;  %2464 = vmatmul.mubr.msk.bf16.gmra.mxu1 %vm535_vm0, %v2570_v17 }
  0x51   : > { %2435 = vmatprep.mubr.msk.bf16.mxu0 %vm535_vm0, %v2571_v18  ;;  %2467 = vmatprep.mubr.msk.bf16.mxu1 %vm535_vm0, %v2572_v19 }
  0x58   : > { %2436 = vmatmul.mubr.msk.bf16.gmra.mxu0 %vm535_vm0, %v2573_v20  ;;  %2468 = vmatmul.mubr.msk.bf16.gmra.mxu1 %vm535_vm0, %v2574_v21 }
  0x59   : > { %2439 = vmatprep.mubr.msk.bf16.mxu0 %vm535_vm0, %v2575_v22  ;;  %2471 = vmatprep.mubr.msk.bf16.mxu1 %vm535_vm0, %v2576_v23 }
  0x60   : > { %2440 = vmatmul.mubr.msk.bf16.gmra.mxu0 %vm535_vm0, %v2577_v24  ;;  %2472 = vmatmul.mubr.msk.bf16.gmra.mxu1 %vm535_vm0, %v2578_v25 }
  0x61   : > { %2443 = vmatprep.mubr.msk.bf16.mxu0 %vm535_vm0, %v2579_v26  ;;  %2475 = vmatprep.mubr.msk.bf16.mxu1 %vm535_vm0, %v2580_v27 }
  0x68   : > { %2444 = vmatmul.mubr.msk.bf16.gmra.mxu0 %vm535_vm0, %v2581_v28  ;;  %2476 = vmatmul.mubr.msk.bf16.gmra.mxu1 %vm535_vm0, %v2582_v29 }
  0x69   : > { %2447 = vmatprep.mubr.msk.bf16.mxu0 %vm535_vm0, %v2583_v30  ;;  %2479 = vmatprep.mubr.msk.bf16.mxu1 %vm535_vm0, %v2584_v31 }
  0x70   : > { %2448 = vmatmul.mubr.msk.bf16.gmra.mxu0 %vm535_vm0, %v2585_v32  ;;  %2480 = vmatmul.mubr.msk.bf16.gmra.mxu1 %vm535_vm0, %v2586_v33 }
  0x71   : > { %1401 = vmatprep.mubr.bf16.mxu1 %v2589_v34  ;;  %1562 = vmatprep.mubr.bf16.mxu0 %v2592_v35 }
  0xf8   : > { %v3054_v36 = vpop.f32.mrf.mxu0  ;;  %v3056_v37 = vpop.f32.mrf.mxu1 }
  0xf9   : > { %3381 = vst [vmem:[#allocation9_spill] sm:$0xff] %v3054_v36  ;;  %3382 = vst [vmem:[#allocation10_spill] sm:$0xff] %v3056_v37 }
  0xfa   : > { %v3058_v38 = vpop.f32.mrf.mxu0  ;;  %v3060_v39 = vpop.f32.mrf.mxu1 }
  0xfb   : > { %3383 = vst [vmem:[#allocation11_spill] sm:$0xff] %v3058_v38  ;;  %3384 = vst [vmem:[#allocation12_spill] sm:$0xff] %v3060_v39 }
  0xfc   : > { %v3062_v40 = vpop.f32.mrf.mxu0  ;;  %v3064_v41 = vpop.f32.mrf.mxu1 }
  0xfd   : > { %3385 = vst [vmem:[#allocation13_spill] sm:$0xff] %v3062_v40  ;;  %3386 = vst [vmem:[#allocation14_spill] sm:$0xff] %v3064_v41 }
  0xfe   : > { %v3070_v44 = vpop.f32.mrf.mxu0  ;;  %v3072_v45 = vpop.f32.mrf.mxu1 }
  0xff   : > { %3387 = vst [vmem:[#allocation15_spill] sm:$0xff] %v3070_v44  ;;  %3388 = vst [vmem:[#allocation16_spill] sm:$0xff] %v3072_v45 }
 0x100   : > { %v3078_v48 = vpop.f32.mrf.mxu0  ;;  %v3080_v49 = vpop.f32.mrf.mxu1 }
 0x102   : > { %v3082_v50 = vpop.f32.mrf.mxu0  ;;  %v3084_v51 = vpop.f32.mrf.mxu1 }
 0x104   : > { %v3086_v52 = vpop.f32.mrf.mxu0  ;;  %v3088_v53 = vpop.f32.mrf.mxu1 }
 0x106   : > { %v3094_v56 = vpop.f32.mrf.mxu0  ;;  %v3096_v57 = vpop.f32.mrf.mxu1 }
 0x108   : > { %v3102_v60 = vpop.f32.mrf.mxu0  ;;  %v3104_v61 = vpop.f32.mrf.mxu1 }
 0x10a   : > { %v3106_v62 = vpop.f32.mrf.mxu0  ;;  %v3108_v63 = vpop.f32.mrf.mxu1 }
 0x10c   : > { %v3110_v0 = vpop.f32.mrf.mxu0  ;;  %v3112_v1 = vpop.f32.mrf.mxu1 }
 0x10e   : > { %v3114_v2 = vpop.f32.mrf.mxu0  ;;  %v3116_v3 = vpop.f32.mrf.mxu1 }
 0x110   : > { %v2433_v4 = vpop.f32.mrf.mxu0  ;;  %v2465_v5 = vpop.f32.mrf.mxu1 }
 0x112   : > { %v714_v6 = vpop.f32.mrf.mxu0  ;;  %v842_v7 = vpop.f32.mrf.mxu1 }
 0x114   : > { %v2434_v8 = vpop.f32.mrf.mxu0  ;;  %v2466_v9 = vpop.f32.mrf.mxu1 }
 0x115   : > { %v1024_v39 = vpack.c.bf16 %v2434_v8, %v2433_v4  ;;  %v1040_v45 = vpack.c.bf16 %v2466_v9, %v2465_v5  ;;  %v3407_v4 = vld [vmem:[#allocation12_spill] sm:$0xff]  ;;  %v2597_v8 = vld [vmem:[%s2912_s9 + $0x20] ss:$16 sps:$4 sm:$0xff]  }
 0x116   : > { %v717_v10 = vpop.f32.mrf.mxu0  ;;  %v845_v11 = vpop.f32.mrf.mxu1  ;;  %v2598_v9 = vld [vmem:[%s2912_s9 + $0x28] ss:$16 sps:$4 sm:$0xff]  }
 0x117   : > { %v1023_v36 = vpack.c.bf16 %v717_v10, %v714_v6  ;;  %v1039_v40 = vpack.c.bf16 %v845_v11, %v842_v7  ;;  %v2593_v6 = vld [vmem:[%s2912_s9 + $0x24] ss:$16 sps:$4 sm:$0xff]   ;;  %v2595_v7 = vld [vmem:[%s2912_s9 + $0x2c] ss:$16 sps:$4 sm:$0xff]  }
 0x118   : > { %v3118_v12 = vpop.f32.mrf.mxu0  ;;  %v3120_v13 = vpop.f32.mrf.mxu1  ;;  %v2599_v10 = vld [vmem:[%s2912_s9 + $0x44] ss:$16 sps:$4 sm:$0xff]   ;;  %v2601_v11 = vld [vmem:[%s2912_s9 + $0x4c] ss:$16 sps:$4 sm:$0xff]  }
 0x11a   : > { %v3122_v14 = vpop.f32.mrf.mxu0  ;;  %v3124_v15 = vpop.f32.mrf.mxu1 }
 0x11b   : > { %3389 = vst [vmem:[#allocation17_spill] sm:$0xff] %v3124_v15 }
 0x11c   : > { %v3126_v16 = vpop.f32.mrf.mxu0  ;;  %v3128_v17 = vpop.f32.mrf.mxu1 }
 0x11e   : > { %v3130_v18 = vpop.f32.mrf.mxu0  ;;  %v3132_v19 = vpop.f32.mrf.mxu1 }
 0x11f   : > { %3390 = vst [vmem:[#allocation18_spill] sm:$0xff] %v3132_v19 }
 0x120   : > { %v2441_v20 = vpop.f32.mrf.mxu0  ;;  %v2473_v21 = vpop.f32.mrf.mxu1 }
 0x122   : > { %v746_v22 = vpop.f32.mrf.mxu0  ;;  %v874_v23 = vpop.f32.mrf.mxu1 }
 0x124   : > { %v2442_v24 = vpop.f32.mrf.mxu0  ;;  %v2474_v25 = vpop.f32.mrf.mxu1 }
 0x126   : > { %v749_v26 = vpop.f32.mrf.mxu0  ;;  %v877_v27 = vpop.f32.mrf.mxu1 }
 0x128   : > { %v2445_v28 = vpop.f32.mrf.mxu0  ;;  %v2477_v29 = vpop.f32.mrf.mxu1 }
 0x12a   : > { %v762_v30 = vpop.f32.mrf.mxu0  ;;  %v890_v31 = vpop.f32.mrf.mxu1 }
 0x12c   : > { %v2446_v32 = vpop.f32.mrf.mxu0  ;;  %v2478_v33 = vpop.f32.mrf.mxu1 }
 0x12d   : > { %v1030_v19 = vpack.c.bf16 %v2446_v32, %v2445_v28  ;;  %v1046_v15 = vpack.c.bf16 %v2478_v33, %v2477_v29  ;;  %v2627_v28 = vld [vmem:[%s2912_s9 + $0xc0] ss:$16 sps:$4 sm:$0xff]   ;;  %v2628_v29 = vld [vmem:[%s2912_s9 + $0xc8] ss:$16 sps:$4 sm:$0xff]  }
 0x12e   : > { %v765_v34 = vpop.f32.mrf.mxu0  ;;  %v893_v35 = vpop.f32.mrf.mxu1  ;;  %v2633_v32 = vld [vmem:[%s2912_s9 + $0xe0] ss:$16 sps:$4 sm:$0xff]   ;;  %v2634_v33 = vld [vmem:[%s2912_s9 + $0xe8] ss:$16 sps:$4 sm:$0xff]  }
 0x130   : > { %v2449_v47 = vpop.f32.mrf.mxu0  ;;  %v2481_v46 = vpop.f32.mrf.mxu1 }
 0x132   : > { %v778_v43 = vpop.f32.mrf.mxu0  ;;  %v906_v42 = vpop.f32.mrf.mxu1 }
 0x134   : > { %v2450_v59 = vpop.f32.mrf.mxu0  ;;  %v2482_v58 = vpop.f32.mrf.mxu1 }
 0x135   : > { %v1032_v55 = vpack.c.bf16 %v2450_v59, %v2449_v47  ;;  %v1048_v54 = vpack.c.bf16 %v2482_v58, %v2481_v46  ;;  %v1022_v46 = vpack.c.bf16 %v3110_v0, %v3102_v60  ;;  %v3392_v47 = vpack.c.bf16 %v3088_v53, %v3080_v49  ;;  %v3396_v53 = vld [vmem:[#allocation18_spill] sm:$0xff]  ;;  %v3397_v60 = vld [vmem:[#allocation13_spill] sm:$0xff]  ;;  %v3403_v0 = vld [vmem:[#allocation15_spill] sm:$0xff] }
 0x136   : > { %v781_v38 = vpop.f32.mrf.mxu0  ;;  %v909_v44 = vpop.f32.mrf.mxu1  ;;  %v3393_v58 = vpack.c.bf16 %v3094_v56, %v3082_v50  ;;  %v1025_v49 = vpack.c.bf16 %v3130_v18, %v3122_v14  ;;  %v3400_v50 = vld [vmem:[#allocation14_spill] sm:$0xff]  ;;  %v2605_v14 = vld [vmem:[%s2912_s9 + $0x64] ss:$16 sps:$4 sm:$0xff]  }
 0x137   : > { %v1031_v37 = vpack.c.bf16 %v781_v38, %v778_v43  ;;  %v1047_v41 = vpack.c.bf16 %v909_v44, %v906_v42  ;;  %2191 = vmatprep.subr.bf16.mxu1 %v1032_v55  ;;  %2303 = vmatprep.subr.bf16.mxu0 %v1048_v54  ;;  %v1038_v38 = vpack.c.bf16 %v3112_v1, %v3104_v61  ;;  %v3398_v61 = vld [vmem:[#allocation9_spill] sm:$0xff]  ;;  %v3401_v56 = vld [vmem:[#allocation10_spill] sm:$0xff]  ;;  %v3404_v1 = vld [vmem:[#allocation11_spill] sm:$0xff] }
 0x138   : > { %2192 = vmatpush3.bf16.msra.mxu1 %v1024_v39  ;;  %2304 = vmatpush3.bf16.msra.mxu0 %v1040_v45  ;;  %v1029_v42 = vpack.c.bf16 %v765_v34, %v762_v30  ;;  %v1045_v43 = vpack.c.bf16 %v893_v35, %v890_v31  ;;  %v1028_v39 = vpack.c.bf16 %v2442_v24, %v2441_v20  ;;  %v2611_v18 = vld [vmem:[%s2912_s9 + $0x84] ss:$16 sps:$4 sm:$0xff]   ;;  %v2615_v20 = vld [vmem:[%s2912_s9 + $0x80] ss:$16 sps:$4 sm:$0xff]   ;;  %v2631_v31 = vld [vmem:[%s2912_s9 + $0xec] ss:$16 sps:$4 sm:$0xff]  }
 0x139   : > { %2193 = vmatprep.subr.bf16.mxu1 %v1031_v37  ;;  %2305 = vmatprep.subr.bf16.mxu0 %v1047_v41  ;;  %v1021_v37 = vpack.c.bf16 %v3114_v2, %v3106_v62  ;;  %v1027_v41 = vpack.c.bf16 %v749_v26, %v746_v22  ;;  %v1043_v44 = vpack.c.bf16 %v877_v27, %v874_v23  ;;  %v2617_v22 = vld [vmem:[%s2912_s9 + $0xa4] ss:$16 sps:$4 sm:$0xff]   ;;  %v2619_v23 = vld [vmem:[%s2912_s9 + $0xac] ss:$16 sps:$4 sm:$0xff]   ;;  %v2621_v24 = vld [vmem:[%s2912_s9 + $0xa0] ss:$16 sps:$4 sm:$0xff]  }
 0x13a   : > { %v3391_v45 = vpack.c.bf16 %v3086_v52, %v3078_v48  ;;  %v1026_v54 = vpack.c.bf16 %v3126_v16, %v3118_v12  ;;  %v1042_v55 = vpack.c.bf16 %v3128_v17, %v3120_v13  ;;  %v3394_v48 = vpack.c.bf16 %v3096_v57, %v3084_v51  ;;  %v3395_v52 = vld [vmem:[#allocation17_spill] sm:$0xff]  ;;  %v2590_v57 = vld [vmem:[%s2912_s9 + $0x8] ss:$16 sps:$4 sm:$0xff]   ;;  %v2625_v27 = vld [vmem:[%s2912_s9 + $0xcc] ss:$16 sps:$4 sm:$0xff]  }
 0x13b   : > { %v1041_v59 = vpack.c.bf16 %v3396_v53, %v3395_v52  ;;  %v3399_v62 = vpack.c.bf16 %v3397_v60, %v3398_v61  ;;  %v2587_v51 = vld [vmem:[%s2912_s9] ss:$16 sps:$4 sm:$0xff]   ;;  %v3405_v2 = vpack.c.bf16 %v3403_v0, %v3404_v1  ;;  %v2604_v13 = vld [vmem:[%s2912_s9 + $0x48] ss:$16 sps:$4 sm:$0xff]   ;;  %v2623_v26 = vld [vmem:[%s2912_s9 + $0xc4] ss:$16 sps:$4 sm:$0xff]  }
 0x13c   : > { %2194 = vmatpush3.bf16.msra.mxu1 %v1023_v36  ;;  %2306 = vmatpush3.bf16.msra.mxu0 %v1039_v40  ;;  %v1037_v36 = vpack.c.bf16 %v3116_v3, %v3108_v63  ;;  %v1044_v40 = vpack.c.bf16 %v2474_v25, %v2473_v21  ;;  %v3402_v63 = vpack.c.bf16 %v3400_v50, %v3401_v56  ;;  %v3406_v3 = vld [vmem:[#allocation16_spill] sm:$0xff]  ;;  %v2603_v12 = vld [vmem:[%s2912_s9 + $0x40] ss:$16 sps:$4 sm:$0xff]   ;;  %v2629_v30 = vld [vmem:[%s2912_s9 + $0xe4] ss:$16 sps:$4 sm:$0xff]  }
 0x13d   : > { %2195 = vmatprep.subr.bf16.mxu1 %v1030_v19  ;;  %2307 = vmatprep.subr.bf16.mxu0 %v1046_v15  ;;  %v3408_v5 = vpack.c.bf16 %v3406_v3, %v3407_v4  ;;  %v2607_v15 = vld [vmem:[%s2912_s9 + $0x6c] ss:$16 sps:$4 sm:$0xff]   ;;  %v2609_v16 = vld [vmem:[%s2912_s9 + $0x60] ss:$16 sps:$4 sm:$0xff]   ;;  %v2610_v17 = vld [vmem:[%s2912_s9 + $0x68] ss:$16 sps:$4 sm:$0xff]  }
 0x13e   : > { %v2613_v19 = vld [vmem:[%s2912_s9 + $0x8c] ss:$16 sps:$4 sm:$0xff]   ;;  %v2616_v21 = vld [vmem:[%s2912_s9 + $0x88] ss:$16 sps:$4 sm:$0xff]   ;;  %v2635_v34 = vld [vmem:[%s2912_s9 + $0x104] ss:$16 sps:$4 sm:$0xff]  }
 0x13f   : > { %v2622_v25 = vld [vmem:[%s2912_s9 + $0xa8] ss:$16 sps:$4 sm:$0xff]   ;;  %v2637_v35 = vld [vmem:[%s2912_s9 + $0x10c] ss:$16 sps:$4 sm:$0xff]   ;;  %v2665_v53 = vld [vmem:[%s2912_s9 + $0x1a4] ss:$16 sps:$4 sm:$0xff]  }
 0x140   : > { %2196 = vmatpush3.bf16.msra.mxu1 %v1022_v46  ;;  %2308 = vmatpush3.bf16.msra.mxu0 %v1038_v38  ;;  %v2639_v46 = vld [vmem:[%s2912_s9 + $0x100] ss:$16 sps:$4 sm:$0xff]   ;;  %v2640_v38 = vld [vmem:[%s2912_s9 + $0x108] ss:$16 sps:$4 sm:$0xff]   ;;  %v2673_v50 = vld [vmem:[%s2912_s9 + $0x1cc] ss:$16 sps:$4 sm:$0xff]  }
 0x141   : > { %2197 = vmatprep.subr.bf16.mxu1 %v1029_v42  ;;  %2309 = vmatprep.subr.bf16.mxu0 %v1045_v43  ;;  %v2641_v42 = vld [vmem:[%s2912_s9 + $0x124] ss:$16 sps:$4 sm:$0xff]   ;;  %v2643_v43 = vld [vmem:[%s2912_s9 + $0x12c] ss:$16 sps:$4 sm:$0xff]   ;;  %v2664_v52 = vld [vmem:[%s2912_s9 + $0x188] ss:$16 sps:$4 sm:$0xff]  }
 0x142   : > { %v2669_v60 = vld [vmem:[%s2912_s9 + $0x1a0] ss:$16 sps:$4 sm:$0xff]   ;;  %v2670_v61 = vld [vmem:[%s2912_s9 + $0x1a8] ss:$16 sps:$4 sm:$0xff]  }
 0x143   : > { %v2675_v56 = vld [vmem:[%s2912_s9 + $0x1c0] ss:$16 sps:$4 sm:$0xff]   ;;  %v2682_v1 = vld [vmem:[%s2912_s9 + $0x1e8] ss:$16 sps:$4 sm:$0xff]  }
 0x144   : > { %2198 = vmatpush3.bf16.msra.mxu1 %v1021_v37  ;;  %2310 = vmatpush3.bf16.msra.mxu0 %v1037_v36  ;;  %v2645_v37 = vld [vmem:[%s2912_s9 + $0x120] ss:$16 sps:$4 sm:$0xff]   ;;  %v2646_v36 = vld [vmem:[%s2912_s9 + $0x128] ss:$16 sps:$4 sm:$0xff]  }
 0x145   : > { %2199 = vmatprep.subr.bf16.mxu1 %v1028_v39  ;;  %2311 = vmatprep.subr.bf16.mxu0 %v1044_v40  ;;  %v2647_v39 = vld [vmem:[%s2912_s9 + $0x144] ss:$16 sps:$4 sm:$0xff]   ;;  %v2649_v40 = vld [vmem:[%s2912_s9 + $0x14c] ss:$16 sps:$4 sm:$0xff]   ;;  %v2681_v0 = vld [vmem:[%s2912_s9 + $0x1e0] ss:$16 sps:$4 sm:$0xff]  }
 0x148   : > { %2200 = vmatpush3.bf16.msra.mxu1 %v3391_v45  ;;  %2312 = vmatpush3.bf16.msra.mxu0 %v3392_v47  ;;  %v2653_v45 = vld [vmem:[%s2912_s9 + $0x164] ss:$16 sps:$4 sm:$0xff]   ;;  %v2655_v47 = vld [vmem:[%s2912_s9 + $0x16c] ss:$16 sps:$4 sm:$0xff]  }
 0x149   : > { %2201 = vmatprep.subr.bf16.mxu1 %v1027_v41  ;;  %2313 = vmatprep.subr.bf16.mxu0 %v1043_v44  ;;  %v2651_v41 = vld [vmem:[%s2912_s9 + $0x140] ss:$16 sps:$4 sm:$0xff]   ;;  %v2652_v44 = vld [vmem:[%s2912_s9 + $0x148] ss:$16 sps:$4 sm:$0xff]  }
 0x14c   : > { %2202 = vmatpush3.bf16.msra.mxu1 %v3393_v58  ;;  %2314 = vmatpush3.bf16.msra.mxu0 %v3394_v48  ;;  %v2659_v58 = vld [vmem:[%s2912_s9 + $0x184] ss:$16 sps:$4 sm:$0xff]   ;;  %v2661_v48 = vld [vmem:[%s2912_s9 + $0x18c] ss:$16 sps:$4 sm:$0xff]  }
 0x14d   : > { %2203 = vmatprep.subr.bf16.mxu1 %v1026_v54  ;;  %2315 = vmatprep.subr.bf16.mxu0 %v1042_v55  ;;  %v2657_v54 = vld [vmem:[%s2912_s9 + $0x160] ss:$16 sps:$4 sm:$0xff]   ;;  %v2658_v55 = vld [vmem:[%s2912_s9 + $0x168] ss:$16 sps:$4 sm:$0xff]  }
 0x150   : > { %2204 = vmatpush3.bf16.msra.mxu1 %v3399_v62  ;;  %2316 = vmatpush3.bf16.msra.mxu0 %v3402_v63  ;;  %v2671_v62 = vld [vmem:[%s2912_s9 + $0x1c4] ss:$16 sps:$4 sm:$0xff]   ;;  %v2676_v63 = vld [vmem:[%s2912_s9 + $0x1c8] ss:$16 sps:$4 sm:$0xff]  }
 0x151   : > { %2205 = vmatprep.subr.bf16.mxu1 %v1025_v49  ;;  %2317 = vmatprep.subr.bf16.mxu0 %v1041_v59  ;;  %v2663_v49 = vld [vmem:[%s2912_s9 + $0x180] ss:$16 sps:$4 sm:$0xff]   ;;  %v2667_v59 = vld [vmem:[%s2912_s9 + $0x1ac] ss:$16 sps:$4 sm:$0xff]  }
 0x154   : > { %2206 = vmatpush3.bf16.msra.mxu1 %v3405_v2  ;;  %2318 = vmatpush3.bf16.msra.mxu0 %v3408_v5 }
 0x157   : > { %1402 = vmatmul.mubr.bf16.vlgmr.msra.gmra.mxu1 %v2587_v51  ;;  %1563 = vmatmul.mubr.bf16.vlgmr.msra.gmra.mxu0 %v2590_v57  ;;  %v2677_v51 = vld [vmem:[%s2912_s9 + $0x1e4] ss:$16 sps:$4 sm:$0xff]   ;;  %v2679_v57 = vld [vmem:[%s2912_s9 + $0x1ec] ss:$16 sps:$4 sm:$0xff]   ;;  %s3243_s9 = scalar_lea.vmem [#allocation6], %s2017_s10 }
 0x158   : > { %1409 = vmatprep.mubr.bf16.mxu1 %v2593_v6  ;;  %1570 = vmatprep.mubr.bf16.mxu0 %v2595_v7  ;;  %s1907_s12 = sshll.u32 %s3243_s9, 4  ;;  %s3314_s12 = int_to_ptr.vmem [resolvable:$true] %s1907_s12 }
 0x159   : > { %s2711_s27 = scalar_lea.vmem %s3314_s12, 4096  ;;  %p2718_p1 = scmp.lt.s32.totalorder %s3314_s12, %s2716_s24 }
 0x15a   : > { %p2712_p8 = scmp.ne.s32.totalorder %s3314_s12, %s2711_s27  ;;  %p2719_p3 = scmp.lt.s32.totalorder %s2717_s26, %s2711_s27 }
 0x15c   : > { %p2713_p12 = pnand %p2712_p8, %p2875_p9  ;;  %p2720_p5 = por %p2719_p3, %p2718_p1 }
 0x15e   : > { %p2714_p0 = pneg %p2713_p12 }
 0x15f   : > { %1410 = vmatmul.mubr.bf16.gmra.mxu1 %v2597_v8  ;;  %1571 = vmatmul.mubr.bf16.gmra.mxu0 %v2598_v9  ;;  %v3239_v8 = vld [vmem:[%s3366_s3] ss:$0 sm:$0xff] }
 0x160   : > { %1417 = vmatprep.mubr.bf16.mxu1 %v2599_v10  ;;  %1578 = vmatprep.mubr.bf16.mxu0 %v2601_v11  ;;  %p2721_p6 = pnand %p2720_p5, %p2714_p0 }
 0x167   : > { %1418 = vmatmul.mubr.bf16.gmra.mxu1 %v2603_v12  ;;  %1579 = vmatmul.mubr.bf16.gmra.mxu0 %v2604_v13 }
 0x168   : > { %1425 = vmatprep.mubr.bf16.mxu1 %v2605_v14  ;;  %1586 = vmatprep.mubr.bf16.mxu0 %v2607_v15 }
 0x16f   : > { %1426 = vmatmul.mubr.bf16.gmra.mxu1 %v2609_v16  ;;  %1587 = vmatmul.mubr.bf16.gmra.mxu0 %v2610_v17 }
 0x170   : > { %1433 = vmatprep.mubr.bf16.mxu1 %v2611_v18  ;;  %1594 = vmatprep.mubr.bf16.mxu0 %v2613_v19 }
 0x177   : > { %1434 = vmatmul.mubr.bf16.gmra.mxu1 %v2615_v20  ;;  %1595 = vmatmul.mubr.bf16.gmra.mxu0 %v2616_v21 }
 0x178   : > { %1441 = vmatprep.mubr.bf16.mxu1 %v2617_v22  ;;  %1602 = vmatprep.mubr.bf16.mxu0 %v2619_v23 }
 0x17f   : > { %1442 = vmatmul.mubr.bf16.gmra.mxu1 %v2621_v24  ;;  %1603 = vmatmul.mubr.bf16.gmra.mxu0 %v2622_v25 }
 0x180   : > { %1449 = vmatprep.mubr.bf16.mxu1 %v2623_v26  ;;  %1610 = vmatprep.mubr.bf16.mxu0 %v2625_v27 }
 0x187   : > { %1450 = vmatmul.mubr.bf16.gmra.mxu1 %v2627_v28  ;;  %1611 = vmatmul.mubr.bf16.gmra.mxu0 %v2628_v29 }
 0x188   : > { %1457 = vmatprep.mubr.bf16.mxu1 %v2629_v30  ;;  %1618 = vmatprep.mubr.bf16.mxu0 %v2631_v31 }
 0x18f   : > { %1458 = vmatmul.mubr.bf16.gmra.mxu1 %v2633_v32  ;;  %1619 = vmatmul.mubr.bf16.gmra.mxu0 %v2634_v33 }
 0x190   : > { %1465 = vmatprep.mubr.bf16.mxu1 %v2635_v34  ;;  %1626 = vmatprep.mubr.bf16.mxu0 %v2637_v35 }
 0x197   : > { %1466 = vmatmul.mubr.bf16.gmra.mxu1 %v2639_v46  ;;  %1627 = vmatmul.mubr.bf16.gmra.mxu0 %v2640_v38 }
 0x198   : > { %1473 = vmatprep.mubr.bf16.mxu1 %v2641_v42  ;;  %1634 = vmatprep.mubr.bf16.mxu0 %v2643_v43 }
 0x19f   : > { %1474 = vmatmul.mubr.bf16.gmra.mxu1 %v2645_v37  ;;  %1635 = vmatmul.mubr.bf16.gmra.mxu0 %v2646_v36 }
 0x1a0   : > { %1481 = vmatprep.mubr.bf16.mxu1 %v2647_v39  ;;  %1642 = vmatprep.mubr.bf16.mxu0 %v2649_v40 }
 0x1a7   : > { %1482 = vmatmul.mubr.bf16.gmra.mxu1 %v2651_v41  ;;  %1643 = vmatmul.mubr.bf16.gmra.mxu0 %v2652_v44 }
 0x1a8   : > { %1489 = vmatprep.mubr.bf16.mxu1 %v2653_v45  ;;  %1650 = vmatprep.mubr.bf16.mxu0 %v2655_v47 }
 0x1af   : > { %1490 = vmatmul.mubr.bf16.gmra.mxu1 %v2657_v54  ;;  %1651 = vmatmul.mubr.bf16.gmra.mxu0 %v2658_v55 }
 0x1b0   : > { %1497 = vmatprep.mubr.bf16.mxu1 %v2659_v58  ;;  %1658 = vmatprep.mubr.bf16.mxu0 %v2661_v48 }
 0x1b7   : > { %1498 = vmatmul.mubr.bf16.gmra.mxu1 %v2663_v49  ;;  %1659 = vmatmul.mubr.bf16.gmra.mxu0 %v2664_v52 }
 0x1b8   : > { %1505 = vmatprep.mubr.bf16.mxu1 %v2665_v53  ;;  %1666 = vmatprep.mubr.bf16.mxu0 %v2667_v59 }
 0x1bf   : > { %1506 = vmatmul.mubr.bf16.gmra.mxu1 %v2669_v60  ;;  %1667 = vmatmul.mubr.bf16.gmra.mxu0 %v2670_v61 }
 0x1c0   : > { %1513 = vmatprep.mubr.bf16.mxu1 %v2671_v62  ;;  %1674 = vmatprep.mubr.bf16.mxu0 %v2673_v50 }
 0x1c7   : > { %1514 = vmatmul.mubr.bf16.gmra.mxu1 %v2675_v56  ;;  %1675 = vmatmul.mubr.bf16.gmra.mxu0 %v2676_v63 }
 0x1c8   : > { %1521 = vmatprep.mubr.bf16.mxu1 %v2677_v51  ;;  %1682 = vmatprep.mubr.bf16.mxu0 %v2679_v57 }
 0x1cf   : > { %1522 = vmatmul.mubr.bf16.gmra.mxu1 %v2681_v0  ;;  %1683 = vmatmul.mubr.bf16.gmra.mxu0 %v2682_v1 }
 0x217   : > { %v2207_v2 = vpop.f32.mrf.mxu1  ;;  %v2319_v3 = vpop.f32.mrf.mxu0 }
 0x219   : > { %v2208_v4 = vpop.f32.mrf.mxu1  ;;  %v2320_v5 = vpop.f32.mrf.mxu0 }
 0x21a   : > { %v2209_v6 = vadd.f32 %v2208_v4, %v2207_v2  ;;  %v2321_v7 = vadd.f32 %v2320_v5, %v2319_v3 }
 0x21b   : > { %v2210_v9 = vpop.f32.mrf.mxu1  ;;  %v2322_v10 = vpop.f32.mrf.mxu0 }
 0x21c   : > { %v1565_v11 = vadd.f32 %v2321_v7, %v2209_v6 }
 0x21d   : > { %v2211_v12 = vpop.f32.mrf.mxu1  ;;  %v2323_v13 = vpop.f32.mrf.mxu0 }
 0x21e   : > { %v1797_v14 = vadd.f32 %v3239_v8, %v1565_v11  ;;  %v2212_v15 = vadd.f32 %v2211_v12, %v2210_v9  ;;  %v2324_v16 = vadd.f32 %v2323_v13, %v2322_v10 }
 0x21f   : > { %v2213_v17 = vpop.f32.mrf.mxu1  ;;  %v2325_v18 = vpop.f32.mrf.mxu0 }
 0x220   : > { %v1829_v19 = vmax.f32 %v1797_v14, 0.0  ;;  %v1568_v20 = vadd.f32 %v2324_v16, %v2212_v15 }
 0x221   : > { %v2214_v21 = vpop.f32.mrf.mxu1  ;;  %v2326_v22 = vpop.f32.mrf.mxu0 }
 0x222   : > { %1861 = vst [vmem:[%s3243_s9] sm:$0xff] %v1829_v19  ;;  %v1798_v23 = vadd.f32 %v3239_v8, %v1568_v20  ;;  %v2215_v24 = vadd.f32 %v2214_v21, %v2213_v17  ;;  %v2327_v25 = vadd.f32 %v2326_v22, %v2325_v18 }
 0x223   : > { %v2216_v26 = vpop.f32.mrf.mxu1  ;;  %v2328_v27 = vpop.f32.mrf.mxu0 }
 0x224   : > { %v1830_v28 = vmax.f32 %v1798_v23, 0.0  ;;  %v1573_v29 = vadd.f32 %v2327_v25, %v2215_v24 }
 0x225   : > { %v2217_v30 = vpop.f32.mrf.mxu1  ;;  %v2329_v31 = vpop.f32.mrf.mxu0 }
 0x226   : > { %1862 = vst [vmem:[%s3243_s9 + $0x8] sm:$0xff] %v1830_v28  ;;  %v1799_v32 = vadd.f32 %v3239_v8, %v1573_v29  ;;  %v2218_v33 = vadd.f32 %v2217_v30, %v2216_v26  ;;  %v2330_v34 = vadd.f32 %v2329_v31, %v2328_v27 }
 0x227   : > { %v2219_v35 = vpop.f32.mrf.mxu1  ;;  %v2331_v46 = vpop.f32.mrf.mxu0 }
 0x228   : > { %v1831_v38 = vmax.f32 %v1799_v32, 0.0  ;;  %v1576_v42 = vadd.f32 %v2330_v34, %v2218_v33 }
 0x229   : > { %v2220_v43 = vpop.f32.mrf.mxu1  ;;  %v2332_v37 = vpop.f32.mrf.mxu0 }
 0x22a   : > { %1863 = vst [vmem:[%s3243_s9 + $0x10] sm:$0xff] %v1831_v38  ;;  %v1800_v36 = vadd.f32 %v3239_v8, %v1576_v42  ;;  %v2221_v39 = vadd.f32 %v2220_v43, %v2219_v35  ;;  %v2333_v40 = vadd.f32 %v2332_v37, %v2331_v46 }
 0x22b   : > { %v2222_v41 = vpop.f32.mrf.mxu1  ;;  %v2334_v44 = vpop.f32.mrf.mxu0 }
 0x22c   : > { %v1832_v45 = vmax.f32 %v1800_v36, 0.0  ;;  %v1581_v47 = vadd.f32 %v2333_v40, %v2221_v39 }
 0x22d   : > { %v2223_v54 = vpop.f32.mrf.mxu1  ;;  %v2335_v55 = vpop.f32.mrf.mxu0 }
 0x22e   : > { %1864 = vst [vmem:[%s3243_s9 + $0x18] sm:$0xff] %v1832_v45  ;;  %v1801_v58 = vadd.f32 %v3239_v8, %v1581_v47  ;;  %v2224_v48 = vadd.f32 %v2223_v54, %v2222_v41  ;;  %v2336_v49 = vadd.f32 %v2335_v55, %v2334_v44 }
 0x22f   : > { %v2225_v52 = vpop.f32.mrf.mxu1  ;;  %v2337_v53 = vpop.f32.mrf.mxu0 }
 0x230   : > { %v1833_v59 = vmax.f32 %v1801_v58, 0.0  ;;  %v1584_v60 = vadd.f32 %v2336_v49, %v2224_v48 }
 0x231   : > { %v2226_v61 = vpop.f32.mrf.mxu1  ;;  %v2338_v62 = vpop.f32.mrf.mxu0 }
 0x232   : > { %1865 = vst [vmem:[%s3243_s9 + $0x20] sm:$0xff] %v1833_v59  ;;  %v1802_v50 = vadd.f32 %v3239_v8, %v1584_v60  ;;  %v2227_v56 = vadd.f32 %v2226_v61, %v2225_v52  ;;  %v2339_v63 = vadd.f32 %v2338_v62, %v2337_v53 }
 0x233   : > { %v2228_v51 = vpop.f32.mrf.mxu1  ;;  %v2340_v57 = vpop.f32.mrf.mxu0 }
 0x234   : > { %v1834_v0 = vmax.f32 %v1802_v50, 0.0  ;;  %v1589_v1 = vadd.f32 %v2339_v63, %v2227_v56 }
 0x235   : > { %v2229_v2 = vpop.f32.mrf.mxu1  ;;  %v2341_v3 = vpop.f32.mrf.mxu0 }
 0x236   : > { %1866 = vst [vmem:[%s3243_s9 + $0x28] sm:$0xff] %v1834_v0  ;;  %v1803_v4 = vadd.f32 %v3239_v8, %v1589_v1  ;;  %v2230_v5 = vadd.f32 %v2229_v2, %v2228_v51  ;;  %v2342_v6 = vadd.f32 %v2341_v3, %v2340_v57 }
 0x237   : > { %v2231_v7 = vpop.f32.mrf.mxu1  ;;  %v2343_v9 = vpop.f32.mrf.mxu0 }
 0x238   : > { %v1835_v10 = vmax.f32 %v1803_v4, 0.0  ;;  %v1592_v11 = vadd.f32 %v2342_v6, %v2230_v5 }
 0x239   : > { %v2232_v12 = vpop.f32.mrf.mxu1  ;;  %v2344_v13 = vpop.f32.mrf.mxu0 }
 0x23a   : > { %1867 = vst [vmem:[%s3243_s9 + $0x30] sm:$0xff] %v1835_v10  ;;  %v1804_v14 = vadd.f32 %v3239_v8, %v1592_v11  ;;  %v2233_v15 = vadd.f32 %v2232_v12, %v2231_v7  ;;  %v2345_v16 = vadd.f32 %v2344_v13, %v2343_v9 }
 0x23b   : > { %v2234_v17 = vpop.f32.mrf.mxu1  ;;  %v2346_v18 = vpop.f32.mrf.mxu0 }
 0x23c   : > { %v1836_v19 = vmax.f32 %v1804_v14, 0.0  ;;  %v1597_v20 = vadd.f32 %v2345_v16, %v2233_v15 }
 0x23d   : > { %v2235_v21 = vpop.f32.mrf.mxu1  ;;  %v2347_v22 = vpop.f32.mrf.mxu0 }
 0x23e   : > { %1868 = vst [vmem:[%s3243_s9 + $0x38] sm:$0xff] %v1836_v19  ;;  %v1805_v23 = vadd.f32 %v3239_v8, %v1597_v20  ;;  %v2236_v24 = vadd.f32 %v2235_v21, %v2234_v17  ;;  %v2348_v25 = vadd.f32 %v2347_v22, %v2346_v18 }
 0x23f   : > { %v2237_v26 = vpop.f32.mrf.mxu1  ;;  %v2349_v27 = vpop.f32.mrf.mxu0 }
 0x240   : > { %v1837_v28 = vmax.f32 %v1805_v23, 0.0  ;;  %v1600_v29 = vadd.f32 %v2348_v25, %v2236_v24 }
 0x241   : > { %v2238_v30 = vpop.f32.mrf.mxu1  ;;  %v2350_v31 = vpop.f32.mrf.mxu0 }
 0x242   : > { %1869 = vst [vmem:[%s3243_s9 + $0x40] sm:$0xff] %v1837_v28  ;;  %v1806_v32 = vadd.f32 %v3239_v8, %v1600_v29  ;;  %v2239_v33 = vadd.f32 %v2238_v30, %v2237_v26  ;;  %v2351_v34 = vadd.f32 %v2350_v31, %v2349_v27 }
 0x243   : > { %v2240_v35 = vpop.f32.mrf.mxu1  ;;  %v2352_v46 = vpop.f32.mrf.mxu0 }
 0x244   : > { %v1838_v38 = vmax.f32 %v1806_v32, 0.0  ;;  %v1605_v42 = vadd.f32 %v2351_v34, %v2239_v33 }
 0x245   : > { %v2241_v43 = vpop.f32.mrf.mxu1  ;;  %v2353_v37 = vpop.f32.mrf.mxu0 }
 0x246   : > { %1870 = vst [vmem:[%s3243_s9 + $0x48] sm:$0xff] %v1838_v38  ;;  %v1807_v36 = vadd.f32 %v3239_v8, %v1605_v42  ;;  %v2242_v39 = vadd.f32 %v2241_v43, %v2240_v35  ;;  %v2354_v40 = vadd.f32 %v2353_v37, %v2352_v46 }
 0x247   : > { %v2243_v41 = vpop.f32.mrf.mxu1  ;;  %v2355_v44 = vpop.f32.mrf.mxu0 }
 0x248   : > { %v1839_v45 = vmax.f32 %v1807_v36, 0.0  ;;  %v1608_v47 = vadd.f32 %v2354_v40, %v2242_v39 }
 0x249   : > { %v2244_v54 = vpop.f32.mrf.mxu1  ;;  %v2356_v55 = vpop.f32.mrf.mxu0 }
 0x24a   : > { %1871 = vst [vmem:[%s3243_s9 + $0x50] sm:$0xff] %v1839_v45  ;;  %v1808_v58 = vadd.f32 %v3239_v8, %v1608_v47  ;;  %v2245_v48 = vadd.f32 %v2244_v54, %v2243_v41  ;;  %v2357_v49 = vadd.f32 %v2356_v55, %v2355_v44 }
 0x24b   : > { %v2246_v52 = vpop.f32.mrf.mxu1  ;;  %v2358_v53 = vpop.f32.mrf.mxu0 }
 0x24c   : > { %v1840_v59 = vmax.f32 %v1808_v58, 0.0  ;;  %v1613_v60 = vadd.f32 %v2357_v49, %v2245_v48 }
 0x24d   : > { %v2247_v61 = vpop.f32.mrf.mxu1  ;;  %v2359_v62 = vpop.f32.mrf.mxu0 }
 0x24e   : > { %1872 = vst [vmem:[%s3243_s9 + $0x58] sm:$0xff] %v1840_v59  ;;  %v1809_v50 = vadd.f32 %v3239_v8, %v1613_v60  ;;  %v2248_v56 = vadd.f32 %v2247_v61, %v2246_v52  ;;  %v2360_v63 = vadd.f32 %v2359_v62, %v2358_v53 }
 0x24f   : > { %v2249_v51 = vpop.f32.mrf.mxu1  ;;  %v2361_v57 = vpop.f32.mrf.mxu0 }
 0x250   : > { %v1841_v0 = vmax.f32 %v1809_v50, 0.0  ;;  %v1616_v1 = vadd.f32 %v2360_v63, %v2248_v56 }
 0x251   : > { %v2250_v2 = vpop.f32.mrf.mxu1  ;;  %v2362_v3 = vpop.f32.mrf.mxu0 }
 0x252   : > { %1873 = vst [vmem:[%s3243_s9 + $0x60] sm:$0xff] %v1841_v0  ;;  %v1810_v4 = vadd.f32 %v3239_v8, %v1616_v1  ;;  %v2251_v5 = vadd.f32 %v2250_v2, %v2249_v51  ;;  %v2363_v6 = vadd.f32 %v2362_v3, %v2361_v57 }
 0x253   : > { %v2252_v7 = vpop.f32.mrf.mxu1  ;;  %v2364_v9 = vpop.f32.mrf.mxu0 }
 0x254   : > { %v1842_v10 = vmax.f32 %v1810_v4, 0.0  ;;  %v1621_v11 = vadd.f32 %v2363_v6, %v2251_v5 }
 0x255   : > { %v2253_v12 = vpop.f32.mrf.mxu1  ;;  %v2365_v13 = vpop.f32.mrf.mxu0 }
 0x256   : > { %1874 = vst [vmem:[%s3243_s9 + $0x68] sm:$0xff] %v1842_v10  ;;  %v1811_v14 = vadd.f32 %v3239_v8, %v1621_v11  ;;  %v2254_v15 = vadd.f32 %v2253_v12, %v2252_v7  ;;  %v2366_v16 = vadd.f32 %v2365_v13, %v2364_v9 }
 0x257   : > { %v2255_v17 = vpop.f32.mrf.mxu1  ;;  %v2367_v18 = vpop.f32.mrf.mxu0 }
 0x258   : > { %v1843_v19 = vmax.f32 %v1811_v14, 0.0  ;;  %v1624_v20 = vadd.f32 %v2366_v16, %v2254_v15 }
 0x259   : > { %v2256_v21 = vpop.f32.mrf.mxu1  ;;  %v2368_v22 = vpop.f32.mrf.mxu0 }
 0x25a   : > { %1875 = vst [vmem:[%s3243_s9 + $0x70] sm:$0xff] %v1843_v19  ;;  %v1812_v23 = vadd.f32 %v3239_v8, %v1624_v20  ;;  %v2257_v24 = vadd.f32 %v2256_v21, %v2255_v17  ;;  %v2369_v25 = vadd.f32 %v2368_v22, %v2367_v18 }
 0x25b   : > { %v2258_v26 = vpop.f32.mrf.mxu1  ;;  %v2370_v27 = vpop.f32.mrf.mxu0 }
 0x25c   : > { %v1844_v28 = vmax.f32 %v1812_v23, 0.0  ;;  %v1629_v29 = vadd.f32 %v2369_v25, %v2257_v24 }
 0x25d   : > { %v2259_v30 = vpop.f32.mrf.mxu1  ;;  %v2371_v31 = vpop.f32.mrf.mxu0 }
 0x25e   : > { %1876 = vst [vmem:[%s3243_s9 + $0x78] sm:$0xff] %v1844_v28  ;;  %v1813_v32 = vadd.f32 %v3239_v8, %v1629_v29  ;;  %v2260_v33 = vadd.f32 %v2259_v30, %v2258_v26  ;;  %v2372_v34 = vadd.f32 %v2371_v31, %v2370_v27 }
 0x25f   : > { %v2261_v35 = vpop.f32.mrf.mxu1  ;;  %v2373_v46 = vpop.f32.mrf.mxu0 }
 0x260   : > { %v1845_v38 = vmax.f32 %v1813_v32, 0.0  ;;  %v1632_v42 = vadd.f32 %v2372_v34, %v2260_v33 }
 0x261   : > { %v2262_v43 = vpop.f32.mrf.mxu1  ;;  %v2374_v37 = vpop.f32.mrf.mxu0 }
 0x262   : > { %1877 = vst [vmem:[%s3243_s9 + $0x80] sm:$0xff] %v1845_v38  ;;  %v1814_v36 = vadd.f32 %v3239_v8, %v1632_v42  ;;  %v2263_v39 = vadd.f32 %v2262_v43, %v2261_v35  ;;  %v2375_v40 = vadd.f32 %v2374_v37, %v2373_v46 }
 0x263   : > { %v2264_v41 = vpop.f32.mrf.mxu1  ;;  %v2376_v44 = vpop.f32.mrf.mxu0 }
 0x264   : > { %v1846_v45 = vmax.f32 %v1814_v36, 0.0  ;;  %v1637_v47 = vadd.f32 %v2375_v40, %v2263_v39 }
 0x265   : > { %v2265_v54 = vpop.f32.mrf.mxu1  ;;  %v2377_v55 = vpop.f32.mrf.mxu0 }
 0x266   : > { %1878 = vst [vmem:[%s3243_s9 + $0x88] sm:$0xff] %v1846_v45  ;;  %v1815_v58 = vadd.f32 %v3239_v8, %v1637_v47  ;;  %v2266_v48 = vadd.f32 %v2265_v54, %v2264_v41  ;;  %v2378_v49 = vadd.f32 %v2377_v55, %v2376_v44 }
 0x267   : > { %v2267_v52 = vpop.f32.mrf.mxu1  ;;  %v2379_v53 = vpop.f32.mrf.mxu0 }
 0x268   : > { %v1847_v59 = vmax.f32 %v1815_v58, 0.0  ;;  %v1640_v60 = vadd.f32 %v2378_v49, %v2266_v48 }
 0x269   : > { %v2268_v61 = vpop.f32.mrf.mxu1  ;;  %v2380_v62 = vpop.f32.mrf.mxu0 }
 0x26a   : > { %1879 = vst [vmem:[%s3243_s9 + $0x90] sm:$0xff] %v1847_v59  ;;  %v1816_v50 = vadd.f32 %v3239_v8, %v1640_v60  ;;  %v2269_v56 = vadd.f32 %v2268_v61, %v2267_v52  ;;  %v2381_v63 = vadd.f32 %v2380_v62, %v2379_v53 }
 0x26b   : > { %v2270_v51 = vpop.f32.mrf.mxu1  ;;  %v2382_v57 = vpop.f32.mrf.mxu0 }
 0x26c   : > { %v1848_v0 = vmax.f32 %v1816_v50, 0.0  ;;  %v1645_v1 = vadd.f32 %v2381_v63, %v2269_v56 }
 0x26d   : > { %v2271_v2 = vpop.f32.mrf.mxu1  ;;  %v2383_v3 = vpop.f32.mrf.mxu0 }
 0x26e   : > { %1880 = vst [vmem:[%s3243_s9 + $0x98] sm:$0xff] %v1848_v0  ;;  %v1817_v4 = vadd.f32 %v3239_v8, %v1645_v1  ;;  %v2272_v5 = vadd.f32 %v2271_v2, %v2270_v51  ;;  %v2384_v6 = vadd.f32 %v2383_v3, %v2382_v57 }
 0x26f   : > { %v2273_v7 = vpop.f32.mrf.mxu1  ;;  %v2385_v9 = vpop.f32.mrf.mxu0 }
 0x270   : > { %v1849_v10 = vmax.f32 %v1817_v4, 0.0  ;;  %v1648_v11 = vadd.f32 %v2384_v6, %v2272_v5 }
 0x271   : > { %v2274_v12 = vpop.f32.mrf.mxu1  ;;  %v2386_v13 = vpop.f32.mrf.mxu0 }
 0x272   : > { %1881 = vst [vmem:[%s3243_s9 + $0xa0] sm:$0xff] %v1849_v10  ;;  %v1818_v14 = vadd.f32 %v3239_v8, %v1648_v11  ;;  %v2275_v15 = vadd.f32 %v2274_v12, %v2273_v7  ;;  %v2387_v16 = vadd.f32 %v2386_v13, %v2385_v9 }
 0x273   : > { %v2276_v17 = vpop.f32.mrf.mxu1  ;;  %v2388_v18 = vpop.f32.mrf.mxu0 }
 0x274   : > { %v1850_v19 = vmax.f32 %v1818_v14, 0.0  ;;  %v1653_v20 = vadd.f32 %v2387_v16, %v2275_v15 }
 0x275   : > { %v2277_v21 = vpop.f32.mrf.mxu1  ;;  %v2389_v22 = vpop.f32.mrf.mxu0 }
 0x276   : > { %1882 = vst [vmem:[%s3243_s9 + $0xa8] sm:$0xff] %v1850_v19  ;;  %v1819_v23 = vadd.f32 %v3239_v8, %v1653_v20  ;;  %v2278_v24 = vadd.f32 %v2277_v21, %v2276_v17  ;;  %v2390_v25 = vadd.f32 %v2389_v22, %v2388_v18 }
 0x277   : > { %v2279_v26 = vpop.f32.mrf.mxu1  ;;  %v2391_v27 = vpop.f32.mrf.mxu0 }
 0x278   : > { %v1851_v28 = vmax.f32 %v1819_v23, 0.0  ;;  %v1656_v29 = vadd.f32 %v2390_v25, %v2278_v24 }
 0x279   : > { %v2280_v30 = vpop.f32.mrf.mxu1  ;;  %v2392_v31 = vpop.f32.mrf.mxu0 }
 0x27a   : > { %1883 = vst [vmem:[%s3243_s9 + $0xb0] sm:$0xff] %v1851_v28  ;;  %v1820_v32 = vadd.f32 %v3239_v8, %v1656_v29  ;;  %v2281_v33 = vadd.f32 %v2280_v30, %v2279_v26  ;;  %v2393_v34 = vadd.f32 %v2392_v31, %v2391_v27 }
 0x27b   : > { %v2282_v35 = vpop.f32.mrf.mxu1  ;;  %v2394_v46 = vpop.f32.mrf.mxu0 }
 0x27c   : > { %v1852_v38 = vmax.f32 %v1820_v32, 0.0  ;;  %v1661_v42 = vadd.f32 %v2393_v34, %v2281_v33 }
 0x27d   : > { %v2283_v43 = vpop.f32.mrf.mxu1  ;;  %v2395_v37 = vpop.f32.mrf.mxu0 }
 0x27e   : > { %1884 = vst [vmem:[%s3243_s9 + $0xb8] sm:$0xff] %v1852_v38  ;;  %v1821_v36 = vadd.f32 %v3239_v8, %v1661_v42  ;;  %v2284_v39 = vadd.f32 %v2283_v43, %v2282_v35  ;;  %v2396_v40 = vadd.f32 %v2395_v37, %v2394_v46 }
 0x27f   : > { %v2285_v41 = vpop.f32.mrf.mxu1  ;;  %v2397_v44 = vpop.f32.mrf.mxu0 }
 0x280   : > { %v1853_v45 = vmax.f32 %v1821_v36, 0.0  ;;  %v1664_v47 = vadd.f32 %v2396_v40, %v2284_v39 }
 0x281   : > { %v2286_v54 = vpop.f32.mrf.mxu1  ;;  %v2398_v55 = vpop.f32.mrf.mxu0 }
 0x282   : > { %1885 = vst [vmem:[%s3243_s9 + $0xc0] sm:$0xff] %v1853_v45  ;;  %v1822_v58 = vadd.f32 %v3239_v8, %v1664_v47  ;;  %v2287_v48 = vadd.f32 %v2286_v54, %v2285_v41  ;;  %v2399_v49 = vadd.f32 %v2398_v55, %v2397_v44 }
 0x283   : > { %v2288_v52 = vpop.f32.mrf.mxu1  ;;  %v2400_v53 = vpop.f32.mrf.mxu0 }
 0x284   : > { %v1854_v59 = vmax.f32 %v1822_v58, 0.0  ;;  %v1669_v60 = vadd.f32 %v2399_v49, %v2287_v48 }
 0x285   : > { %v2289_v61 = vpop.f32.mrf.mxu1  ;;  %v2401_v62 = vpop.f32.mrf.mxu0 }
 0x286   : > { %1886 = vst [vmem:[%s3243_s9 + $0xc8] sm:$0xff] %v1854_v59  ;;  %v1823_v50 = vadd.f32 %v3239_v8, %v1669_v60  ;;  %v2290_v56 = vadd.f32 %v2289_v61, %v2288_v52  ;;  %v2402_v63 = vadd.f32 %v2401_v62, %v2400_v53 }
 0x287   : > { %v2291_v51 = vpop.f32.mrf.mxu1  ;;  %v2403_v57 = vpop.f32.mrf.mxu0 }
 0x288   : > { %v1855_v0 = vmax.f32 %v1823_v50, 0.0  ;;  %v1672_v1 = vadd.f32 %v2402_v63, %v2290_v56 }
 0x289   : > { %v2292_v2 = vpop.f32.mrf.mxu1  ;;  %v2404_v3 = vpop.f32.mrf.mxu0 }
 0x28a   : > { %1887 = vst [vmem:[%s3243_s9 + $0xd0] sm:$0xff] %v1855_v0  ;;  %v1824_v4 = vadd.f32 %v3239_v8, %v1672_v1  ;;  %v2293_v5 = vadd.f32 %v2292_v2, %v2291_v51  ;;  %v2405_v6 = vadd.f32 %v2404_v3, %v2403_v57 }
 0x28b   : > { %v2294_v7 = vpop.f32.mrf.mxu1  ;;  %v2406_v9 = vpop.f32.mrf.mxu0 }
 0x28c   : > { %v1856_v10 = vmax.f32 %v1824_v4, 0.0  ;;  %v1677_v11 = vadd.f32 %v2405_v6, %v2293_v5 }
 0x28d   : > { %v2295_v12 = vpop.f32.mrf.mxu1  ;;  %v2407_v13 = vpop.f32.mrf.mxu0 }
 0x28e   : > { %1888 = vst [vmem:[%s3243_s9 + $0xd8] sm:$0xff] %v1856_v10  ;;  %v1825_v14 = vadd.f32 %v3239_v8, %v1677_v11  ;;  %v2296_v15 = vadd.f32 %v2295_v12, %v2294_v7  ;;  %v2408_v16 = vadd.f32 %v2407_v13, %v2406_v9 }
 0x28f   : > { %v2297_v17 = vpop.f32.mrf.mxu1  ;;  %v2409_v18 = vpop.f32.mrf.mxu0 }
 0x290   : > { %v1857_v19 = vmax.f32 %v1825_v14, 0.0  ;;  %v1680_v20 = vadd.f32 %v2408_v16, %v2296_v15 }
 0x291   : > { %v2298_v21 = vpop.f32.mrf.mxu1  ;;  %v2410_v22 = vpop.f32.mrf.mxu0 }
 0x292   : > { %1889 = vst [vmem:[%s3243_s9 + $0xe0] sm:$0xff] %v1857_v19  ;;  %v1826_v23 = vadd.f32 %v3239_v8, %v1680_v20  ;;  %v2299_v24 = vadd.f32 %v2298_v21, %v2297_v17  ;;  %v2411_v25 = vadd.f32 %v2410_v22, %v2409_v18 }
 0x293   : > { %v2300_v26 = vpop.f32.mrf.mxu1  ;;  %v2412_v27 = vpop.f32.mrf.mxu0 }
 0x294   : > { %v1858_v28 = vmax.f32 %v1826_v23, 0.0  ;;  %v1685_v29 = vadd.f32 %v2411_v25, %v2299_v24 }
 0x295   : > { %v2301_v30 = vpop.f32.mrf.mxu1  ;;  %v2413_v31 = vpop.f32.mrf.mxu0 }
 0x296   : > { %1890 = vst [vmem:[%s3243_s9 + $0xe8] sm:$0xff] %v1858_v28  ;;  %v1827_v32 = vadd.f32 %v3239_v8, %v1685_v29  ;;  %v2302_v33 = vadd.f32 %v2301_v30, %v2300_v26  ;;  %v2414_v34 = vadd.f32 %v2413_v31, %v2412_v27 }
 0x298   : > { %v1859_v35 = vmax.f32 %v1827_v32, 0.0  ;;  %v1688_v46 = vadd.f32 %v2414_v34, %v2302_v33 }
 0x29a   : > { %1891 = vst [vmem:[%s3243_s9 + $0xf0] sm:$0xff] %v1859_v35  ;;  %v1828_v38 = vadd.f32 %v3239_v8, %v1688_v46 }
 0x29c   : > { %v1860_v42 = vmax.f32 %v1828_v38, 0.0 }
 0x29e   : > { %1892 = vst [vmem:[%s3243_s9 + $0xf8] sm:$0xff] %v1860_v42 }
 0x29f   : > { %2724 = shalt.err (!%p2721_p6)
}
 0x2a0   : > { %s2725_s25 = scalar_lea.hbm %s3312_s21, 4096  ;;  %s2729_s8 = scalar_lea.hbm %s3367_s4, 8192 }
 0x2a1   : > { %p2726_p7 = scmp.ne.s32.totalorder %s3312_s21, %s2725_s25  ;;  %p2730_p13 = scmp.lt.s32.totalorder %s3312_s21, %s3367_s4 }
 0x2a2   : > { %p2731_p2 = scmp.lt.s32.totalorder %s2729_s8, %s2725_s25 }
 0x2a3   : > { %p2727_p10 = pnand %p2726_p7, %p2875_p9 }
 0x2a4   : > { %p2732_p8 = por %p2731_p2, %p2730_p13 }
 0x2a5   : > { %p2728_p4 = pneg %p2727_p10 }
 0x2a7   : > { %p2733_p12 = pnand %p2732_p8, %p2728_p4 }
 0x2a9   : > { %2736 = shalt.err (!%p2733_p12)
}
 0x2aa   : > { %s2797_s11 = smov 128   ;;  %s2798_s13 = smov 8  }
 0x2ab   : > { %2489 = dma.vmem_to_hbm [thread:$0]  (%p2875_p9), %s3314_s12, 4096, %s3312_s21, %s1894_s22, %s2797_s11, %s2797_s11, %s2798_s13  }
 0x2ac PF: > { %s1922_s14 = sand.u32 1, %s2771_s15   ;;  %p3409_p0 = scmp.ge.s32.totalorder %s2791_s20, 2 }
 0x2ad   : > { %s1923_s27 = scalar_lea.sflag [#allocation5], %s1922_s14 }
 0x2ae   : > { %p2496_p1 = pnand %p3409_p0, %p2882_p11 }
 0x2b0   : > { %p2497_p3 = pneg %p2496_p1 }
 0x2b2   : > { %2766 = dma.done.wait (%p2497_p3), %s1923_s27, 4096  }
 0x2b3   : > { %2768 = vsyncadd (%p2497_p3), %s1923_s27, 4294963200  ;;  %s20_s20 = sadd.s32 1, %s2791_s20   ;;  %s3410_s15 = smov %s2775_s16 }
 0x2b4   : > { %p17_p5 = scmp.ge.s32.totalorder %s20_s20, 4   ;;  %s3411_s16 = smov %s2779_s17 }
 0x2b5   : > { %s3412_s17 = smov %s2880_s29  ;;  %s3413_s18 = smov %s2787_s19 }
 0x2b6   : > { %s3414_s19 = smov %s3416_s23  ;;  %19 = sbr.rel (!%p17_p5) target bundleno = 6 (0x6), region = 92 }
 0x2bb   :  { %1928 = vsyncpa [#allocation4], 1 }
 0x2bc   :  { %1930 = vsyncpa [#allocation4 + $0x1], 1 }
 0x2bd   :  { %1931 = vsyncpa [#allocation5], 1 }
 0x2be   :  { %1933 = vsyncpa [#allocation5 + $0x1], 1 }

</bundles_post_ra>
